<compile_context>
chip_gen: v7x
topology: tpu7x:2x2x1
jax: 0.10.0
libtpu: 0.0.40
codegen_flags: <defaults>
</compile_context>

<pallas_src>
import functools

import jax
import jax.numpy as jnp
from jax.experimental import pallas as pl
from jax.experimental.pallas import tpu as pltpu

ARCH = "bninception_double_normalize"
EMBED_DIM = 32          # opt.embed_dim
C_IN = 3                # RGB input
C_FEAT = 64             # stand-in for BNInception's 1024 feature channels (scaled down)
BN_EPS = 1e-5
LANE = 128


def _round_up(v, m):
    return -(-v // m) * m


def _pick_tile_rows(hw, target=512):
    """Largest row-tile <= target that divides hw (multiple of 8), else the full hw."""
    if hw <= target:
        return hw
    start = target - (target % 8)
    for t in range(start, 7, -8):
        if hw % t == 0:
            return t
    return hw


# ----------------------------------------------------------------------------
# Fused kernel: conv-as-matmul + BN + ReLU + avg/max pool + last_linear + normalize
# ----------------------------------------------------------------------------
def fused_kernel(p_ref, w_ref, scale_ref, shift_ref, lw_ref, lb_ref,
                 feat_ref, z_ref, y_ref, sum_sc, max_sc,
                 *, inv_hw, double, normalize):
    t = pl.program_id(1)
    nt = pl.num_programs(1)

    @pl.when(t == 0)
    def _():
        sum_sc[...] = jnp.zeros_like(sum_sc)
        max_sc[...] = jnp.full_like(max_sc, -jnp.inf)

    # conv tile on the MXU: bf16 inputs, f32 accumulation
    acc = jnp.dot(p_ref[0], w_ref[...], preferred_element_type=jnp.float32)
    # folded BatchNorm (inference) + ReLU epilogue in f32
    f = jnp.maximum(acc * scale_ref[...] + shift_ref[...], 0.0)     # (tile_rows, C_pad)
    feat_ref[0] = f

    # adaptive avg/max pool partial reductions over this spatial tile
    sum_sc[...] += jnp.sum(f, axis=0, keepdims=True)
    max_sc[...] = jnp.maximum(max_sc[...], jnp.max(f, axis=0, keepdims=True))

    @pl.when(t == nt - 1)
    def _():
        y = sum_sc[...] * inv_hw                                    # AdaptiveAvgPool2d(1)
        if double:
            y = y + max_sc[...]                                     # + AdaptiveMaxPool2d(1)
        y_ref[0] = y
        z = jnp.dot(y, lw_ref[...], preferred_element_type=jnp.float32) + lb_ref[...]
        if normalize:
            inv = jax.lax.rsqrt(
                jnp.maximum(jnp.sum(z * z, axis=-1, keepdims=True), 1e-24))
            z = z * inv                                             # F.normalize(dim=-1)
        z_ref[0] = z


# ----------------------------------------------------------------------------
# Full Network.forward
# ----------------------------------------------------------------------------
def network_forward(x, params, *, double, normalize):
    # TODO(synk): the full pretrained BNInception inception-block stack is not replicated;
    #             a single conv+BN+ReLU stem stands in for model.features here.
    conv_w = params["conv_w"]
    N, Cin, H, W = x.shape
    Cout, _, KH, KW = conv_w.shape
    stride, pad = 2, 1
    Ho = (H + 2 * pad - KH) // stride + 1
    Wo = (W + 2 * pad - KW) // stride + 1
    HW = Ho * Wo
    E = params["lin_w"].shape[0]

    # ---- im2col glue (plain JAX), patch-major / channel-last, cast to bf16 ----
    # TODO(synk): patch assembly still materializes the im2col matrix in HBM; moving it
    #             in-kernel (K-grid over (kh, kw) with strided DMA) would cut read traffic.
    x_nhwc = jnp.transpose(x, (0, 2, 3, 1))
    x_padded = jnp.pad(x_nhwc, ((0, 0), (pad, pad), (pad, pad), (0, 0)))
    cols = []
    for kh in range(KH):
        for kw in range(KW):
            cols.append(x_padded[:, kh:kh + stride * Ho:stride,
                                 kw:kw + stride * Wo:stride, :])
    patches = jnp.concatenate(cols, axis=-1).reshape(N, HW, KH * KW * Cin)

    K = KH * KW * Cin
    K_pad = max(LANE, _round_up(K, LANE))
    C_pad = max(LANE, _round_up(Cout, LANE))
    E_pad = max(LANE, _round_up(E, LANE))

    pm = jnp.pad(patches, ((0, 0), (0, 0), (0, K_pad - K))).astype(jnp.bfloat16)
    w_mat = jnp.transpose(conv_w, (2, 3, 1, 0)).reshape(K, Cout)
    wm = jnp.pad(w_mat, ((0, K_pad - K), (0, C_pad - Cout))).astype(jnp.bfloat16)

    # fold BN (inference semantics) into scale/shift; padded channels get scale=shift=0
    scale = params["bn_gamma"] / jnp.sqrt(params["bn_var"] + BN_EPS)
    shift = params["bn_beta"] - params["bn_mean"] * scale
    scale_p = jnp.pad(scale, (0, C_pad - Cout)).reshape(1, C_pad).astype(jnp.float32)
    shift_p = jnp.pad(shift, (0, C_pad - Cout)).reshape(1, C_pad).astype(jnp.float32)

    lw_p = jnp.pad(params["lin_w"].T,
                   ((0, C_pad - Cout), (0, E_pad - E))).astype(jnp.float32)
    lb_p = jnp.pad(params["lin_b"], (0, E_pad - E)).reshape(1, E_pad).astype(jnp.float32)

    tile_rows = _pick_tile_rows(HW)
    T = HW // tile_rows

    kernel = functools.partial(fused_kernel, inv_hw=1.0 / HW,
                               double=double, normalize=normalize)

    feat_p, z_p, y_p = pl.pallas_call(
        kernel,
        out_shape=(
            jax.ShapeDtypeStruct((N, HW, C_pad), jnp.float32),   # channel-last feature map
            jax.ShapeDtypeStruct((N, 1, E_pad), jnp.float32),    # embedding z
            jax.ShapeDtypeStruct((N, 1, C_pad), jnp.float32),    # pooled y
        ),
        grid=(N, T),
        in_specs=[
            pl.BlockSpec((1, tile_rows, K_pad), lambda n, t: (n, t, 0)),
            pl.BlockSpec((K_pad, C_pad), lambda n, t: (0, 0)),
            pl.BlockSpec((1, C_pad), lambda n, t: (0, 0)),
            pl.BlockSpec((1, C_pad), lambda n, t: (0, 0)),
            pl.BlockSpec((C_pad, E_pad), lambda n, t: (0, 0)),
            pl.BlockSpec((1, E_pad), lambda n, t: (0, 0)),
        ],
        out_specs=(
            pl.BlockSpec((1, tile_rows, C_pad), lambda n, t: (n, t, 0)),
            pl.BlockSpec((1, 1, E_pad), lambda n, t: (n, 0, 0)),
            pl.BlockSpec((1, 1, C_pad), lambda n, t: (n, 0, 0)),
        ),
        scratch_shapes=[
            pltpu.VMEM((1, C_pad), jnp.float32),   # running sum (avg pool)
            pltpu.VMEM((1, C_pad), jnp.float32),   # running max (max pool)
        ],
        compiler_params=pltpu.CompilerParams(
            dimension_semantics=("parallel", "arbitrary")),
    )(pm, wm, scale_p, shift_p, lw_p, lb_p)

    z = z_p[:, 0, :E]
    y = y_p[:, 0, :Cout]
    feat = jnp.transpose(feat_p[:, :, :Cout].reshape(N, Ho, Wo, Cout), (0, 3, 1, 2))
    y4 = y.reshape(N, Cout, 1, 1)   # matches AdaptiveAvgPool2d(1) output shape
    return z, (y4, feat)


# ----------------------------------------------------------------------------
# Pure-JAX reference for correctness (inputs rounded to bf16 to match MXU input rounding)
# ----------------------------------------------------------------------------
def reference_forward(x, params, *, double, normalize):
    xb = x.astype(jnp.bfloat16).astype(jnp.float32)
    wb = params["conv_w"].astype(jnp.bfloat16).astype(jnp.float32)
    out = jax.lax.conv_general_dilated(
        xb, wb, window_strides=(2, 2), padding=((1, 1), (1, 1)),
        dimension_numbers=("NCHW", "OIHW", "NCHW"),
        precision=jax.lax.Precision.HIGHEST)
    scale = params["bn_gamma"] / jnp.sqrt(params["bn_var"] + BN_EPS)
    shift = params["bn_beta"] - params["bn_mean"] * scale
    feat = jnp.maximum(out * scale[None, :, None, None]
                       + shift[None, :, None, None], 0.0)
    y = feat.mean(axis=(2, 3))
    if double:
        y = y + feat.max(axis=(2, 3))
    z = y @ params["lin_w"].T + params["lin_b"]
    if normalize:
        z = z / jnp.maximum(jnp.linalg.norm(z, axis=-1, keepdims=True), 1e-12)
    return z, y, feat


if __name__ == "__main__":
    key = jax.random.PRNGKey(0)
    k_x, k_cw, k_g, k_b, k_m, k_lw, k_lb = jax.random.split(key, 7)

    # deterministic parameter init (shapes per module __init__; scaled-down backbone)
    params = {
        "conv_w": 0.1 * jax.random.normal(k_cw, (C_FEAT, C_IN, 3, 3), jnp.float32),
        "bn_gamma": 1.0 + 0.01 * jax.random.normal(k_g, (C_FEAT,), jnp.float32),
        "bn_beta": 0.01 * jax.random.normal(k_b, (C_FEAT,), jnp.float32),
        "bn_mean": 0.01 * jax.random.normal(k_m, (C_FEAT,), jnp.float32),
        "bn_var": jnp.ones((C_FEAT,), jnp.float32),
        # nn.Linear default init: U(-1/sqrt(fan_in), 1/sqrt(fan_in))
        "lin_w": jax.random.uniform(k_lw, (EMBED_DIM, C_FEAT), jnp.float32,
                                    -1.0 / jnp.sqrt(C_FEAT), 1.0 / jnp.sqrt(C_FEAT)),
        "lin_b": jax.random.uniform(k_lb, (EMBED_DIM,), jnp.float32,
                                    -1.0 / jnp.sqrt(C_FEAT), 1.0 / jnp.sqrt(C_FEAT)),
    }

    # small NCHW image batch
    x = jax.random.normal(k_x, (2, C_IN, 16, 16), jnp.float32)

    double = "double" in ARCH
    normalize = "normalize" in ARCH

    fwd = jax.jit(functools.partial(network_forward, double=double, normalize=normalize))
    z, (y4, feat) = fwd(x, params)
    jax.block_until_ready((z, y4, feat))

    z_ref, y_ref, feat_ref = reference_forward(x, params,
                                               double=double, normalize=normalize)

    assert z.shape == (2, EMBED_DIM) and y4.shape == (2, C_FEAT, 1, 1)
    assert feat.shape == (2, C_FEAT, 8, 8)
    assert jnp.allclose(feat, feat_ref, atol=2e-3, rtol=2e-3)
    assert jnp.allclose(y4[:, :, 0, 0], y_ref, atol=2e-3, rtol=2e-3)
    assert jnp.allclose(z, z_ref, atol=2e-3, rtol=2e-3)

    print("KERNEL_OK")
</pallas_src>

<mosaic_0001>
module attributes {stable_mosaic.version = 11 : i64} {
  func.func @fused_kernel(%arg0: i32, %arg1: i32, %arg2: memref<1x64x128xbf16, #tpu.memory_space<vmem>>, %arg3: memref<128x128xbf16, #tpu.memory_space<vmem>>, %arg4: memref<1x128xf32, #tpu.memory_space<vmem>>, %arg5: memref<1x128xf32, #tpu.memory_space<vmem>>, %arg6: memref<128x128xf32, #tpu.memory_space<vmem>>, %arg7: memref<1x128xf32, #tpu.memory_space<vmem>>, %arg8: memref<1x64x128xf32, #tpu.memory_space<vmem>>, %arg9: memref<1x1x128xf32, #tpu.memory_space<vmem>>, %arg10: memref<1x1x128xf32, #tpu.memory_space<vmem>>, %arg11: memref<1x128xf32, #tpu.memory_space<vmem>>, %arg12: memref<1x128xf32, #tpu.memory_space<vmem>>) attributes {dimension_semantics = [#tpu.dimension_semantics<parallel>, #tpu.dimension_semantics<arbitrary>], iteration_bounds = array<i64: 2, 1>, scalar_prefetch = 0 : i64, scratch_operands = 2 : i64, tpu.core_type = #tpu.core_type<tc>, window_params = [{transform_indices = @transform_0, window_bounds = array<i64: 1, 64, 128>}, {pipeline_mode = #tpu.pipeline_mode<synchronous>, transform_indices = @transform_1, window_bounds = array<i64: 128, 128>}, {pipeline_mode = #tpu.pipeline_mode<synchronous>, transform_indices = @transform_2, window_bounds = array<i64: 1, 128>}, {pipeline_mode = #tpu.pipeline_mode<synchronous>, transform_indices = @transform_3, window_bounds = array<i64: 1, 128>}, {pipeline_mode = #tpu.pipeline_mode<synchronous>, transform_indices = @transform_4, window_bounds = array<i64: 128, 128>}, {pipeline_mode = #tpu.pipeline_mode<synchronous>, transform_indices = @transform_5, window_bounds = array<i64: 1, 128>}, {transform_indices = @transform_6, window_bounds = array<i64: 1, 64, 128>}, {transform_indices = @transform_7, window_bounds = array<i64: 1, 1, 128>}, {transform_indices = @transform_8, window_bounds = array<i64: 1, 1, 128>}]} {
    %c0_i32 = arith.constant 0 : i32
    %0 = arith.cmpi eq, %arg1, %c0_i32 : i32
    %1 = arith.extui %0 : i1 to i32
    %c0_i32_0 = arith.constant 0 : i32
    %2 = arith.cmpi ne, %1, %c0_i32_0 : i32
    scf.if %2 {
      %cst_25 = arith.constant 0.000000e+00 : f32
      %31 = vector.broadcast %cst_25 : f32 to vector<1x128xf32>
      %c0_26 = arith.constant 0 : index
      %c0_27 = arith.constant 0 : index
      %32 = vector.load %arg11[%c0_26, %c0_27] : memref<1x128xf32, #tpu.memory_space<vmem>>, vector<1x128xf32>
      tpu.vector_store %arg11[%c0_26, %c0_27], %31 {strides = array<i32>} : memref<1x128xf32, #tpu.memory_space<vmem>>, vector<1x128xf32>,
      %cst_28 = arith.constant 0xFF800000 : f32
      %33 = vector.broadcast %cst_28 : f32 to vector<1x128xf32>
      %c0_29 = arith.constant 0 : index
      %c0_30 = arith.constant 0 : index
      %34 = vector.load %arg12[%c0_29, %c0_30] : memref<1x128xf32, #tpu.memory_space<vmem>>, vector<1x128xf32>
      tpu.vector_store %arg12[%c0_29, %c0_30], %33 {strides = array<i32>} : memref<1x128xf32, #tpu.memory_space<vmem>>, vector<1x128xf32>,
    } else {
    }
    %c0 = arith.constant 0 : index
    %c0_1 = arith.constant 0 : index
    %c0_2 = arith.constant 0 : index
    %3 = vector.load %arg2[%c0, %c0_1, %c0_2] : memref<1x64x128xbf16, #tpu.memory_space<vmem>>, vector<1x64x128xbf16>
    %4 = vector.shape_cast %3 : vector<1x64x128xbf16> to vector<64x128xbf16>
    %c0_3 = arith.constant 0 : index
    %c0_4 = arith.constant 0 : index
    %5 = vector.load %arg3[%c0_3, %c0_4] : memref<128x128xbf16, #tpu.memory_space<vmem>>, vector<128x128xbf16>
    %cst = arith.constant dense<0.000000e+00> : vector<64x128xf32>
    %6 = tpu.matmul %4, %5, %cst {dimension_numbers = #tpu.dot_dimension_numbers<[1], [0], [0], [1], [0, 0, 1, 1], [], []>} : vector<64x128xbf16>, vector<128x128xbf16>, vector<64x128xf32> -> vector<64x128xf32>
    %c0_5 = arith.constant 0 : index
    %c0_6 = arith.constant 0 : index
    %7 = vector.load %arg4[%c0_5, %c0_6] : memref<1x128xf32, #tpu.memory_space<vmem>>, vector<1x128xf32>
    %8 = vector.broadcast %7 : vector<1x128xf32> to vector<64x128xf32>
    %9 = arith.mulf %6, %8 : vector<64x128xf32>
    %c0_7 = arith.constant 0 : index
    %c0_8 = arith.constant 0 : index
    %10 = vector.load %arg5[%c0_7, %c0_8] : memref<1x128xf32, #tpu.memory_space<vmem>>, vector<1x128xf32>
    %11 = vector.broadcast %10 : vector<1x128xf32> to vector<64x128xf32>
    %12 = arith.addf %9, %11 : vector<64x128xf32>
    %cst_9 = arith.constant 0.000000e+00 : f32
    %13 = vector.broadcast %cst_9 : f32 to vector<64x128xf32>
    %14 = arith.maximumf %12, %13 : vector<64x128xf32>
    %c0_10 = arith.constant 0 : index
    %c0_11 = arith.constant 0 : index
    %c0_12 = arith.constant 0 : index
    %15 = vector.load %arg8[%c0_10, %c0_11, %c0_12] : memref<1x64x128xf32, #tpu.memory_space<vmem>>, vector<1x64x128xf32>
    %16 = vector.shape_cast %15 : vector<1x64x128xf32> to vector<64x128xf32>
    %17 = vector.shape_cast %14 : vector<64x128xf32> to vector<1x64x128xf32>
    tpu.vector_store %arg8[%c0_10, %c0_11, %c0_12], %17 {strides = array<i32>} : memref<1x64x128xf32, #tpu.memory_space<vmem>>, vector<1x64x128xf32>,
    %c0_13 = arith.constant 0 : index
    %c0_14 = arith.constant 0 : index
    %18 = vector.load %arg11[%c0_13, %c0_14] : memref<1x128xf32, #tpu.memory_space<vmem>>, vector<1x128xf32>
    %cst_15 = arith.constant dense<0.000000e+00> : vector<128xf32>
    %19 = vector.multi_reduction <add>, %14, %cst_15 [0] : vector<64x128xf32> to vector<128xf32>
    %20 = vector.shape_cast %19 : vector<128xf32> to vector<1x128xf32>
    %21 = arith.addf %18, %20 : vector<1x128xf32>
    %c0_16 = arith.constant 0 : index
    %c0_17 = arith.constant 0 : index
    %22 = vector.load %arg11[%c0_16, %c0_17] : memref<1x128xf32, #tpu.memory_space<vmem>>, vector<1x128xf32>
    tpu.vector_store %arg11[%c0_16, %c0_17], %21 {strides = array<i32>} : memref<1x128xf32, #tpu.memory_space<vmem>>, vector<1x128xf32>,
    %c0_18 = arith.constant 0 : index
    %c0_19 = arith.constant 0 : index
    %23 = vector.load %arg12[%c0_18, %c0_19] : memref<1x128xf32, #tpu.memory_space<vmem>>, vector<1x128xf32>
    %cst_20 = arith.constant dense<0xFF800000> : vector<128xf32>
    %24 = vector.multi_reduction <maximumf>, %14, %cst_20 [0] : vector<64x128xf32> to vector<128xf32>
    %25 = vector.shape_cast %24 : vector<128xf32> to vector<1x128xf32>
    %26 = arith.maximumf %23, %25 : vector<1x128xf32>
    %c0_21 = arith.constant 0 : index
    %c0_22 = arith.constant 0 : index
    %27 = vector.load %arg12[%c0_21, %c0_22] : memref<1x128xf32, #tpu.memory_space<vmem>>, vector<1x128xf32>
    tpu.vector_store %arg12[%c0_21, %c0_22], %26 {strides = array<i32>} : memref<1x128xf32, #tpu.memory_space<vmem>>, vector<1x128xf32>,
    %c0_i32_23 = arith.constant 0 : i32
    %28 = arith.cmpi eq, %arg1, %c0_i32_23 : i32
    %29 = arith.extui %28 : i1 to i32
    %c0_i32_24 = arith.constant 0 : i32
    %30 = arith.cmpi ne, %29, %c0_i32_24 : i32
    scf.if %30 {
      %c0_25 = arith.constant 0 : index
      %c0_26 = arith.constant 0 : index
      %31 = vector.load %arg11[%c0_25, %c0_26] : memref<1x128xf32, #tpu.memory_space<vmem>>, vector<1x128xf32>
      %cst_27 = arith.constant 1.562500e-02 : f32
      %32 = vector.broadcast %cst_27 : f32 to vector<1x128xf32>
      %33 = arith.mulf %31, %32 : vector<1x128xf32>
      %c0_28 = arith.constant 0 : index
      %c0_29 = arith.constant 0 : index
      %34 = vector.load %arg12[%c0_28, %c0_29] : memref<1x128xf32, #tpu.memory_space<vmem>>, vector<1x128xf32>
      %35 = arith.addf %33, %34 : vector<1x128xf32>
      %c0_30 = arith.constant 0 : index
      %c0_31 = arith.constant 0 : index
      %c0_32 = arith.constant 0 : index
      %36 = vector.load %arg10[%c0_30, %c0_31, %c0_32] : memref<1x1x128xf32, #tpu.memory_space<vmem>>, vector<1x1x128xf32>
      %37 = vector.shape_cast %36 : vector<1x1x128xf32> to vector<1x128xf32>
      %38 = vector.shape_cast %35 : vector<1x128xf32> to vector<1x1x128xf32>
      tpu.vector_store %arg10[%c0_30, %c0_31, %c0_32], %38 {strides = array<i32>} : memref<1x1x128xf32, #tpu.memory_space<vmem>>, vector<1x1x128xf32>,
      %c0_33 = arith.constant 0 : index
      %c0_34 = arith.constant 0 : index
      %39 = vector.load %arg6[%c0_33, %c0_34] : memref<128x128xf32, #tpu.memory_space<vmem>>, vector<128x128xf32>
      %cst_35 = arith.constant dense<0.000000e+00> : vector<1x128xf32>
      %40 = tpu.matmul %35, %39, %cst_35 {dimension_numbers = #tpu.dot_dimension_numbers<[1], [0], [0], [1], [0, 0, 1, 1], [], []>} : vector<1x128xf32>, vector<128x128xf32>, vector<1x128xf32> -> vector<1x128xf32>
      %c0_36 = arith.constant 0 : index
      %c0_37 = arith.constant 0 : index
      %41 = vector.load %arg7[%c0_36, %c0_37] : memref<1x128xf32, #tpu.memory_space<vmem>>, vector<1x128xf32>
      %42 = arith.addf %40, %41 : vector<1x128xf32>
      %43 = arith.mulf %42, %42 : vector<1x128xf32>
      %cst_38 = arith.constant dense<0.000000e+00> : vector<1xf32>
      %44 = vector.multi_reduction <add>, %43, %cst_38 [1] : vector<1x128xf32> to vector<1xf32>
      %45 = vector.shape_cast %44 : vector<1xf32> to vector<1x1xf32>
      %cst_39 = arith.constant 1.000000e-24 : f32
      %46 = vector.broadcast %cst_39 : f32 to vector<1x1xf32>
      %47 = arith.maximumf %45, %46 : vector<1x1xf32>
      %48 = math.rsqrt %47 : vector<1x1xf32>
      %49 = vector.broadcast %48 : vector<1x1xf32> to vector<1x128xf32>
      %50 = arith.mulf %42, %49 : vector<1x128xf32>
      %c0_40 = arith.constant 0 : index
      %c0_41 = arith.constant 0 : index
      %c0_42 = arith.constant 0 : index
      %51 = vector.load %arg9[%c0_40, %c0_41, %c0_42] : memref<1x1x128xf32, #tpu.memory_space<vmem>>, vector<1x1x128xf32>
      %52 = vector.shape_cast %51 : vector<1x1x128xf32> to vector<1x128xf32>
      %53 = vector.shape_cast %50 : vector<1x128xf32> to vector<1x1x128xf32>
      tpu.vector_store %arg9[%c0_40, %c0_41, %c0_42], %53 {strides = array<i32>} : memref<1x1x128xf32, #tpu.memory_space<vmem>>, vector<1x1x128xf32>,
    } else {
    }
    return
  }
  func.func @transform_0(%arg0: i32, %arg1: i32) -> (i32, i32, i32) {
    %c0_i32 = arith.constant 0 : i32
    %c0_i32_0 = arith.constant 0 : i32
    return %arg0, %arg1, %c0_i32 : i32, i32, i32
  }
  func.func @transform_1(%arg0: i32, %arg1: i32) -> (i32, i32) {
    %c0_i32 = arith.constant 0 : i32
    %c0_i32_0 = arith.constant 0 : i32
    %c0_i32_1 = arith.constant 0 : i32
    return %c0_i32, %c0_i32_0 : i32, i32
  }
  func.func @transform_2(%arg0: i32, %arg1: i32) -> (i32, i32) {
    %c0_i32 = arith.constant 0 : i32
    %c0_i32_0 = arith.constant 0 : i32
    %c0_i32_1 = arith.constant 0 : i32
    return %c0_i32, %c0_i32_0 : i32, i32
  }
  func.func @transform_3(%arg0: i32, %arg1: i32) -> (i32, i32) {
    %c0_i32 = arith.constant 0 : i32
    %c0_i32_0 = arith.constant 0 : i32
    %c0_i32_1 = arith.constant 0 : i32
    return %c0_i32, %c0_i32_0 : i32, i32
  }
  func.func @transform_4(%arg0: i32, %arg1: i32) -> (i32, i32) {
    %c0_i32 = arith.constant 0 : i32
    %c0_i32_0 = arith.constant 0 : i32
    %c0_i32_1 = arith.constant 0 : i32
    return %c0_i32, %c0_i32_0 : i32, i32
  }
  func.func @transform_5(%arg0: i32, %arg1: i32) -> (i32, i32) {
    %c0_i32 = arith.constant 0 : i32
    %c0_i32_0 = arith.constant 0 : i32
    %c0_i32_1 = arith.constant 0 : i32
    return %c0_i32, %c0_i32_0 : i32, i32
  }
  func.func @transform_6(%arg0: i32, %arg1: i32) -> (i32, i32, i32) {
    %c0_i32 = arith.constant 0 : i32
    %c0_i32_0 = arith.constant 0 : i32
    return %arg0, %arg1, %c0_i32 : i32, i32, i32
  }
  func.func @transform_7(%arg0: i32, %arg1: i32) -> (i32, i32, i32) {
    %c0_i32 = arith.constant 0 : i32
    %c0_i32_0 = arith.constant 0 : i32
    %c0_i32_1 = arith.constant 0 : i32
    return %arg0, %c0_i32, %c0_i32_0 : i32, i32, i32
  }
  func.func @transform_8(%arg0: i32, %arg1: i32) -> (i32, i32, i32) {
    %c0_i32 = arith.constant 0 : i32
    %c0_i32_0 = arith.constant 0 : i32
    %c0_i32_1 = arith.constant 0 : i32
    return %arg0, %c0_i32, %c0_i32_0 : i32, i32, i32
  }
}

</mosaic_0001>

<bundles_post_ra>
// kernel: network_forward.1
= control target key start
LH: loop header
LB: loop body
LE: loop exit
PB: predicated region body
PF: predicated region fallthrough
CT: control target
= control target key end

     0   :  { %14 = vsyncpa [#allocation5], 0  ;;  %s1427_s0 = inlined_call_operand.vmem [shape: bf16[2,64,128], index: 0, kind: input, shape index: {}]   ;;  %s1428_s1 = inlined_call_operand.vmem [shape: bf16[128,128], index: 1, kind: input, shape index: {}]   ;;  %s1429_s2 = inlined_call_operand.vmem [shape: f32[1,128], index: 2, kind: input, shape index: {}]   ;;  %s1430_s3 = inlined_call_operand.vmem [shape: f32[1,128], index: 3, kind: input, shape index: {}]   ;;  %s1431_s4 = inlined_call_operand.vmem [shape: f32[128,128], index: 4, kind: input, shape index: {}]   ;;  %s1432_s5 = inlined_call_operand.vmem [shape: f32[1,128], index: 5, kind: input, shape index: {}]   ;;  %s1433_s6 = inlined_call_operand.vmem [shape: f32[2,64,128], index: 6, kind: output, shape index: {0}]   ;;  %s1434_s7 = inlined_call_operand.hbm [shape: f32[2,1,128], index: 7, kind: output, shape index: {1}]   ;;  %s1435_s8 = inlined_call_operand.vmem [shape: f32[2,1,128], index: 8, kind: output, shape index: {2}]  }
   0x1   :  { %16 = vsyncpa [#allocation5 + $0x1], 0  ;;  %s1213_s27 = smov 0   ;;  %s1215_s28 = smov 0  }
   0x2   :  { %s1217_s29 = smov 0   ;;  %s1219_s30 = smov 0  }
   0x3   :  { %s1221_s9 = smov 0   ;;  %s1223_s10 = smov 0  }
   0x4 LB: > { %s870_s11 = sadd.s32 4294967295, %s1161_s10   ;;  %s871_s12 = sadd.s32 4294967294, %s1161_s10   ;;  %s1161_s10 = sphi %s1223_s10, %s22_s10   ;;  %s1157_s9 = sphi %s1221_s9, %s1442_s9   ;;  %s1153_s30 = sphi %s1219_s30, %s1441_s30   ;;  %s1149_s29 = sphi %s1217_s29, %s1440_s29   ;;  %s1145_s28 = sphi %s1215_s28, %s1439_s28   ;;  %s1141_s27 = sphi %s1213_s27, %s1438_s27  }
   0x5   : > { %s34_s13 = sadd.s32 1, %s1157_s9  ;;  %s202_s14 = sadd.s32 1, %s1149_s29 }
   0x6   : > { %p36_p0 = scmp.ge.s32.totalorder %s34_s13, 2  ;;  %p212_p1 = scmp.ne.s32.totalorder %s1149_s29, %s1145_s28 }
   0x7   : > { %p213_p2 = scmp.eq.s32.totalorder %s870_s11, 1  ;;  %p218_p3 = scmp.ne.s32.totalorder %s1145_s28, %s1141_s27 }
   0x8   : > { %s1444_s13 = smov (%p36_p0, %s34_s13), 0  ;;  %p219_p5 = scmp.eq.s32.totalorder %s871_s12, 1 }
   0x9   : > { %p1253_p4 = por %p213_p2, %p212_p1  ;;  %s199_s16 = ssub.s32 %s1157_s9, %s1444_s13 }
   0xa   : > { %p874_p6 = scmp.ge.s32.totalorder %s1161_s10, 1  ;;  %p200_p7 = scmp.eq.s32.totalorder %s199_s16, 0 }
   0xb   : > { %p1260_p8 = por %p219_p5, %p218_p3  ;;  %p291_p9 = scmp.lt.s32.totalorder %s1161_s10, 3 }
   0xc   : > { %s1266_s18 = scalar_select %p200_p7, %s1149_s29, %s202_s14  }
   0xd   : > { %p292_p10 = pnand %p874_p6, %p291_p9 }
   0xe   : > { %v1069_v0 = vld [vmem:[%s1428_s1] sm:$0xff] (!%p292_p10)   ;;  %p341_p11 = scmp.lt.s32.totalorder (!%p292_p10), %s1153_s30, 1  ;;  %v1070_v1 = vld [vmem:[%s1428_s1 + $0x8] sm:$0xff] (!%p292_p10)   ;;  %v1071_v2 = vld [vmem:[%s1428_s1 + $0x10] sm:$0xff] (!%p292_p10)   ;;  %v1163_v15 = vmov (!%p292_p10), 0.0|0.0   ;;  %v1164_v16 = vmov (!%p292_p10), -inf  }
   0xf   : > { %295 = sbr.rel (%p292_p10) target bundleno = 696 (0x2b8), region = 44  ;;  %927 = vmatprep.subr.bf16.mxu0 (!%p292_p10), %v1069_v0  ;;  %v1072_v3 = vld [vmem:[%s1428_s1 + $0x18] sm:$0xff] (!%p292_p10)   ;;  %v1073_v5 = vld [vmem:[%s1428_s1 + $0x20] sm:$0xff] (!%p292_p10)   ;;  %v1074_v6 = vld [vmem:[%s1428_s1 + $0x28] sm:$0xff] (!%p292_p10)   ;;  %986 = vmatprep.subr.bf16.mxu1 (!%p292_p10), %v1163_v15  ;;  %369 = vst [vmem:[#allocation3] sm:$0x1] (!%p292_p10), %v1164_v16 }
  0x10   : > { %928 = vmatpush3.bf16.msra.mxu0 (!%p292_p10), %v1069_v0  ;;  %v1075_v7 = vld [vmem:[%s1428_s1 + $0x30] sm:$0xff] (!%p292_p10)   ;;  %v1076_v8 = vld [vmem:[%s1428_s1 + $0x38] sm:$0xff] (!%p292_p10)   ;;  %v617_v12 = vld [vmem:[%s1431_s4] sm:$0xff] (!%p292_p10)  ;;  %v1165_v25 = vmov (!%p292_p10), 0.0   ;;  %vm1166_vm0 = vmmov (!%p292_p10), 0   ;;  %vm705_vm1 = vcmask (!%p292_p10), 1040384  }
  0x11   : > { %929 = vmatprep.subr.bf16.mxu0 (!%p292_p10), %v1070_v1  ;;  %v618_v13 = vld [vmem:[%s1431_s4 + $0x8] sm:$0xff] (!%p292_p10)  ;;  %v619_v17 = vld [vmem:[%s1431_s4 + $0x10] sm:$0xff] (!%p292_p10)  ;;  %v620_v18 = vld [vmem:[%s1431_s4 + $0x18] sm:$0xff] (!%p292_p10)  ;;  %368 = vst [vmem:[#allocation2] sm:$0x1] (!%p292_p10), %v1165_v25  ;;  %983 = vmatprep.mubr.msk.f32.mxu1 (!%p292_p10), %vm1166_vm0, %v1165_v25  ;;  %s893_s19 = sshll.u32 (!%p292_p10), %s1153_s30, 4 }
  0x12   : > { %v987_v14 = vpack.c.bf16 (!%p292_p10), %v618_v13, %v617_v12  ;;  %v990_v19 = vpack.c.bf16 (!%p292_p10), %v620_v18, %v619_v17  ;;  %v621_v20 = vld [vmem:[%s1431_s4 + $0x20] sm:$0xff] (!%p292_p10)  ;;  %v622_v21 = vld [vmem:[%s1431_s4 + $0x28] sm:$0xff] (!%p292_p10)  ;;  %v623_v23 = vld [vmem:[%s1431_s4 + $0x30] sm:$0xff] (!%p292_p10) }
  0x13   : > { %v993_v22 = vpack.c.bf16 (!%p292_p10), %v622_v21, %v621_v20  ;;  %v624_v24 = vld [vmem:[%s1431_s4 + $0x38] sm:$0xff] (!%p292_p10)  ;;  %v625_v27 = vld [vmem:[%s1431_s4 + $0x40] sm:$0xff] (!%p292_p10)  ;;  %v626_v28 = vld [vmem:[%s1431_s4 + $0x48] sm:$0xff] (!%p292_p10) }
  0x14   : > { %930 = vmatpush3.bf16.msra.mxu0 (!%p292_p10), %v1070_v1  ;;  %988 = vmatpush3.bf16.msra.mxu1 (!%p292_p10), %v987_v14  ;;  %v996_v26 = vpack.c.bf16 (!%p292_p10), %v624_v24, %v623_v23  ;;  %v999_v29 = vpack.c.bf16 (!%p292_p10), %v626_v28, %v625_v27  ;;  %v627_v30 = vld [vmem:[%s1431_s4 + $0x50] sm:$0xff] (!%p292_p10)  ;;  %v628_v31 = vld [vmem:[%s1431_s4 + $0x58] sm:$0xff] (!%p292_p10)  ;;  %v629_v33 = vld [vmem:[%s1431_s4 + $0x60] sm:$0xff] (!%p292_p10) }
  0x15   : > { %931 = vmatprep.subr.bf16.mxu0 (!%p292_p10), %v1071_v2  ;;  %989 = vmatprep.subr.bf16.mxu1 (!%p292_p10), %v1163_v15  ;;  %v1002_v32 = vpack.c.bf16 (!%p292_p10), %v628_v31, %v627_v30  ;;  %v630_v34 = vld [vmem:[%s1431_s4 + $0x68] sm:$0xff] (!%p292_p10)  ;;  %v631_v36 = vld [vmem:[%s1431_s4 + $0x70] sm:$0xff] (!%p292_p10)  ;;  %v632_v37 = vld [vmem:[%s1431_s4 + $0x78] sm:$0xff] (!%p292_p10) }
  0x16   : > { %s1276_s23 = scalar_select %p341_p11, %s1153_s30, 1  ;;  %v1005_v35 = vpack.c.bf16 %v630_v34, %v629_v33  ;;  %v1008_v38 = vpack.c.bf16 %v632_v37, %v631_v36  ;;  %v891_v39 = vld [vmem:[%s1429_s2] ss:$0 sm:$0xff]  ;;  %v593_v33 = vld [vmem:[#allocation3] sm:$0x1] }
  0x17   : > { %v892_v41 = vld [vmem:[%s1430_s3] ss:$0 sm:$0xff]  ;;  %s1167_s30 = smov [#allocation4]  }
  0x18   : > { %s896_s26 = sshll.u32 %s1276_s23, 5  ;;  %932 = vmatpush3.bf16.msra.mxu0 %v1071_v2  ;;  %991 = vmatpush3.bf16.msra.mxu1 %v990_v19  ;;  %s897_s21 = sshll.u32 %s1276_s23, 6  ;;  %v577_v34 = vld [vmem:[#allocation2] sm:$0x1] }
  0x19   : > { %s348_s14 = scalar_lea.vmem %s1427_s0, %s896_s26  ;;  %933 = vmatprep.subr.bf16.mxu0 %v1072_v3  ;;  %992 = vmatprep.subr.bf16.mxu1 %v1163_v15  ;;  %s362_s11 = scalar_lea.vmem %s1435_s8, %s1276_s23 }
  0x1a   : > { %v1077_v4 = vld [vmem:[%s348_s14] sm:$0xff]   ;;  %v1078_v9 = vld [vmem:[%s348_s14 + $0x8] sm:$0xff]   ;;  %v1079_v10 = vld [vmem:[%s348_s14 + $0x10] sm:$0xff]   ;;  %s333_s23 = sand.u32 1, %s1145_s28  }
  0x1b   : > { %943 = vmatprep.mubr.bf16.mxu0 %v1077_v4  ;;  %v1080_v11 = vld [vmem:[%s348_s14 + $0x18] sm:$0xff]   ;;  %s1358_s14 = scalar_lea.vmem %s1433_s6, %s897_s21  ;;  %s334_s20 = scalar_lea.vmem [#allocation4], %s333_s23 }
  0x1c   : > { %934 = vmatpush3.bf16.msra.mxu0 %v1072_v3  ;;  %994 = vmatpush3.bf16.msra.mxu1 %v993_v22  ;;  %s742_s21 = sshll.u32 %s334_s20, 4  ;;  %s723_s25 = scalar_lea.sflag [#allocation5], %s333_s23  ;;  %s1382_s21 = int_to_ptr.vmem [resolvable:$true] %s742_s21 }
  0x1d   : > { %935 = vmatprep.subr.bf16.mxu0 %v1073_v5  ;;  %995 = vmatprep.subr.bf16.mxu1 %v1163_v15  ;;  %s1083_s26 = scalar_lea.vmem %s1382_s21, 16 }
  0x1e   : > { %p1084_p12 = scmp.ne.s32.totalorder %s1382_s21, %s1083_s26 }
  0x20   : > { %936 = vmatpush3.bf16.msra.mxu0 %v1073_v5  ;;  %997 = vmatpush3.bf16.msra.mxu1 %v996_v26  ;;  %p1085_p13 = pnand %p1084_p12, %p1253_p4 }
  0x21   : > { %937 = vmatprep.subr.bf16.mxu0 %v1074_v6  ;;  %998 = vmatprep.subr.bf16.mxu1 %v1163_v15 }
  0x22   : > { %p1086_p0 = pneg %p1085_p13 }
  0x24   : > { %938 = vmatpush3.bf16.msra.mxu0 %v1074_v6  ;;  %1000 = vmatpush3.bf16.msra.mxu1 %v999_v29 }
  0x25   : > { %939 = vmatprep.subr.bf16.mxu0 %v1075_v7  ;;  %1001 = vmatprep.subr.bf16.mxu1 %v1163_v15 }
  0x28   : > { %940 = vmatpush3.bf16.msra.mxu0 %v1075_v7  ;;  %1003 = vmatpush3.bf16.msra.mxu1 %v1002_v32 }
  0x29   : > { %941 = vmatprep.subr.bf16.mxu0 %v1076_v8  ;;  %1004 = vmatprep.subr.bf16.mxu1 %v1163_v15 }
  0x2c   : > { %942 = vmatpush3.bf16.msra.mxu0 %v1076_v8  ;;  %1006 = vmatpush3.bf16.msra.mxu1 %v1005_v35 }
  0x2d   : > { %1007 = vmatprep.subr.bf16.mxu1 %v1163_v15 }
  0x2f   : > { %944 = vmatmul.mubr.bf16.vlgmr.msra.gmra.mrb[0].mxu0 %v1078_v9 }
  0x30   : > { %947 = vmatprep.mubr.bf16.mxu0 %v1079_v10  ;;  %1009 = vmatpush3.bf16.msra.mxu1 %v1008_v38 }
  0x37   : > { %948 = vmatmul.mubr.bf16.gmra.mrb[4].mxu0 %v1080_v11 }
 0x102   : > { %v945_v40 = vpop.f32.mrb[0].mxu0 }
 0x103   : > { %v540_v42 = vmul.f32 %v945_v40, %v891_v39  ;;  %v500_v43 = vpop.f32.mrb[1].mxu0 }
 0x104   : > { %v538_v44 = vmul.f32 %v891_v39, %v500_v43  ;;  %v946_v45 = vpop.f32.mrb[2].mxu0  ;;  %v633_v43 = vld [vmem:[%s1432_s5] sm:$0x1] }
 0x105   : > { %v555_v46 = vadd.f32 %v892_v41, %v540_v42  ;;  %v541_v47 = vmul.f32 %v946_v45, %v891_v39  ;;  %v503_v48 = vpop.f32.mrb[3].mxu0 }
 0x106   : > { %v553_v49 = vadd.f32 %v892_v41, %v538_v44  ;;  %v539_v50 = vmul.f32 %v891_v39, %v503_v48 }
 0x107   : > { %v563_v51 = vmax.f32 %v555_v46, 0.0  ;;  %v556_v52 = vadd.f32 %v892_v41, %v541_v47 }
 0x108   : > { %v561_v53 = vmax.f32 %v553_v49, 0.0  ;;  %v554_v54 = vadd.f32 %v892_v41, %v539_v50 }
 0x109   : > { %571 = vst [vmem:[%s1358_s14 + $0x10] sm:$0xff] %v563_v51  ;;  %v564_v55 = vmax.f32 %v556_v52, 0.0 }
 0x10a   : > { %569 = vst [vmem:[%s1358_s14] sm:$0xff] %v561_v53  ;;  %v562_v56 = vmax.f32 %v554_v54, 0.0  ;;  %v949_v57 = vpop.f32.mrb[4].mxu0 }
 0x10b   : > { %572 = vst [vmem:[%s1358_s14 + $0x18] sm:$0xff] %v564_v55  ;;  %v544_v58 = vmul.f32 %v949_v57, %v891_v39  ;;  %v516_v59 = vpop.f32.mrb[5].mxu0 }
 0x10c   : > { %570 = vst [vmem:[%s1358_s14 + $0x8] sm:$0xff] %v562_v56  ;;  %v578_v60 = vadd.f32 %v562_v56, %v561_v53  ;;  %v542_v61 = vmul.f32 %v891_v39, %v516_v59  ;;  %v950_v62 = vpop.f32.mrb[6].mxu0 }
 0x10d   : > { %v559_v63 = vadd.f32 %v892_v41, %v544_v58  ;;  %v545_v0 = vmul.f32 %v950_v62, %v891_v39  ;;  %v519_v1 = vpop.f32.mrb[7].mxu0 }
 0x10e   : > { %v579_v2 = vadd.f32 %v578_v60, %v563_v51  ;;  %v557_v3 = vadd.f32 %v892_v41, %v542_v61  ;;  %v543_v4 = vmul.f32 %v891_v39, %v519_v1 }
 0x10f   : > { %v567_v5 = vmax.f32 %v559_v63, 0.0  ;;  %v560_v6 = vadd.f32 %v892_v41, %v545_v0 }
 0x110   : > { %v565_v7 = vmax.f32 %v557_v3, 0.0  ;;  %v580_v8 = vadd.f32 %v579_v2, %v564_v55  ;;  %v558_v9 = vadd.f32 %v892_v41, %v543_v4 }
 0x111   : > { %575 = vst [vmem:[%s1358_s14 + $0x30] sm:$0xff] %v567_v5  ;;  %v596_v10 = vmax.f32 %v563_v51, %v567_v5  ;;  %v568_v11 = vmax.f32 %v560_v6, 0.0 }
 0x112   : > { %573 = vst [vmem:[%s1358_s14 + $0x20] sm:$0xff] %v565_v7  ;;  %v581_v12 = vadd.f32 %v580_v8, %v565_v7  ;;  %v594_v13 = vmax.f32 %v561_v53, %v565_v7  ;;  %v566_v14 = vmax.f32 %v558_v9, 0.0 }
 0x113   : > { %576 = vst [vmem:[%s1358_s14 + $0x38] sm:$0xff] %v568_v11  ;;  %v597_v15 = vmax.f32 %v564_v55, %v568_v11 }
 0x114   : > { %574 = vst [vmem:[%s1358_s14 + $0x28] sm:$0xff] %v566_v14  ;;  %v582_v16 = vadd.f32 %v581_v12, %v566_v14  ;;  %v595_v17 = vmax.f32 %v562_v56, %v566_v14  ;;  %s1380_s14 = scalar_lea.hbm %s1434_s7, %s893_s19 }
 0x115   : > { %v599_v18 = vmax.f32 %v596_v10, %v597_v15 }
 0x116   : > { %v583_v19 = vadd.f32 %v582_v16, %v567_v5  ;;  %v598_v20 = vmax.f32 %v594_v13, %v595_v17 }
 0x118   : > { %v584_v21 = vadd.f32 %v583_v19, %v568_v11  ;;  %v600_v22 = vmax.f32 %v598_v20, %v599_v18 }
 0x11a   : > { %v585_v23 = vrot.slane %v584_v21, 4  ;;  %v601_v24 = vrot.slane %v600_v22, 4 }
 0x11c   : > { %v602_v25 = vmax.f32 %v600_v22, %v601_v24  ;;  %v586_v26 = vadd.f32 %v585_v23, %v584_v21 }
 0x11e   : > { %v603_v27 = vrot.slane %v602_v25, 2  ;;  %v587_v28 = vrot.slane %v586_v26, 2 }
 0x120   : > { %v604_v29 = vmax.f32 %v602_v25, %v603_v27  ;;  %v588_v30 = vadd.f32 %v587_v28, %v586_v26 }
 0x122   : > { %v605_v31 = vrot.slane %v604_v29, 1  ;;  %v589_v32 = vrot.slane %v588_v30, 1 }
 0x124   : > { %v606_v35 = vmax.f32 %v604_v29, %v605_v31  ;;  %v590_v36 = vadd.f32 %v589_v32, %v588_v30 }
 0x126   : > { %v607_v37 = vmax.f32 %v593_v33, %v606_v35  ;;  %v591_v38 = vadd.f32 %v590_v36, %v577_v34 }
 0x128   : > { %608 = vst [vmem:[#allocation3] sm:$0x1] %v607_v37  ;;  %592 = vst [vmem:[#allocation2] sm:$0x1] %v591_v38 }
 0x12f   : > { %v612_v39 = vld [vmem:[#allocation2] sm:$0x1]  ;;  %v614_v41 = vld [vmem:[#allocation3] sm:$0x1] }
 0x130   : > { %v613_v40 = vmul.f32 0.015625, %v612_v39 }
 0x132   : > { %v615_v42 = vadd.f32 %v614_v41, %v613_v40 }
 0x134   : > { %616 = vst [vmem:[%s362_s11] sm:$0x1] %v615_v42  ;;  %984 = vmatmul.mubr.f32.vlgmr.msra.gmra.mrb[0].mxu1 %v615_v42  ;;  %s1087_s11 = sshll.u32 %s1167_s30, 4  ;;  %s1088_s11 = int_to_ptr.vmem [resolvable:$false] %s1087_s11 }
 0x135   : > { %s1089_s12 = scalar_lea.vmem %s1088_s11, 32  ;;  %p1090_p1 = scmp.lt.s32.totalorder %s1382_s21, %s1088_s11 }
 0x136   : > { %p1091_p2 = scmp.lt.s32.totalorder %s1089_s12, %s1083_s26 }
 0x138   : > { %p1092_p3 = por %p1091_p2, %p1090_p1 }
 0x13a   : > { %p1093_p5 = pnand %p1092_p3, %p1086_p0 }
 0x207   : > { %v700_v44 = vpop.f32.mrb[0].mxu1 }
 0x208   : > { %v701_v45 = vadd.f32 %v700_v44, %v633_v43  ;;  %v985_v46 = vpop.f32.mrb[1].mxu1 }
 0x20a   : > { %v704_v47 = vmul.f32 %v701_v45, %v701_v45 }
 0x20c   : > { %v706_v48 = vsel %vm705_vm1, %v704_v47, 0.0 }
 0x20d   : > { %707 = vadd.xlane.f32.xlu0 %v706_v48 }
 0x29a   : > { %v708_v49 = vpop.xlane.xlu0 %707 }
 0x29b   : > { %v709_v50 = vmax.f32 %v708_v49, 1e-24 }
 0x29d   : > { %1081 = vrsqrt.f32 %v709_v50 }
 0x2a7   : > { %v1082_v51 = vpop.eup %1081 }
 0x2a8   : > { %v711_v52 = vmul.f32 %v1082_v51, %v701_v45 }
 0x2aa   : > { %712 = vst [vmem:[%s334_s20] sm:$0x1] %v711_v52 }
 0x2ab   : > { %1096 = shalt.err (!%p1093_p5)
}
 0x2ac   : > { %s1097_s16 = scalar_lea.hbm %s1380_s14, 16  ;;  %s1101_s20 = scalar_lea.hbm %s1434_s7, 32 }
 0x2ad   : > { %p1098_p6 = scmp.ne.s32.totalorder %s1380_s14, %s1097_s16  ;;  %p1102_p10 = scmp.lt.u32.totalorder %s1380_s14, %s1434_s7 }
 0x2ae   : > { %p1103_p11 = scmp.lt.u32.totalorder %s1101_s20, %s1097_s16  ;;  %p1105_p13 = scmp.lt.u32.totalorder %s1097_s16, %s1380_s14 }
 0x2af   : > { %p1099_p7 = pnand %p1098_p6, %p1253_p4 }
 0x2b0   : > { %p1104_p12 = por %p1103_p11, %p1102_p10 }
 0x2b1   : > { %p1100_p9 = pneg %p1099_p7 }
 0x2b2   : > { %p1106_p0 = por %p1105_p13, %p1104_p12 }
 0x2b4   : > { %p1107_p1 = pnand %p1106_p0, %p1100_p9 }
 0x2b6   : > { %1110 = shalt.err (!%p1107_p1)
}
 0x2b7   : > { %1010 = dma.vmem_to_hbm [thread:$0]  (%p1253_p4), %s1382_s21, 16, %s1380_s14, %s723_s25  }
 0x2b8 PF: > { %p1016_p2 = scmp.ge.s32.totalorder %s1161_s10, 2  ;;  %s769_s26 = sand.u32 1, %s1141_s27  }
 0x2b9   : > { %s770_s30 = scalar_lea.sflag [#allocation5], %s769_s26 }
 0x2ba   : > { %p1013_p3 = pnand %p1016_p2, %p1260_p8 }
 0x2bc   : > { %1136 = dma.done.wait (!%p1013_p3), %s770_s30, 16  }
 0x2bd   : > { %1138 = vsyncadd (!%p1013_p3), %s770_s30, 4294967280  ;;  %s22_s10 = sadd.s32 1, %s1161_s10   ;;  %s1438_s27 = smov %s1145_s28 }
 0x2be   : > { %p19_p5 = scmp.ge.s32.totalorder %s22_s10, 4   ;;  %s1439_s28 = smov %s1149_s29 }
 0x2bf   : > { %s1440_s29 = smov %s1266_s18  ;;  %s1441_s30 = smov %s1157_s9 }
 0x2c0   : > { %s1442_s9 = smov %s1444_s13  ;;  %21 = sbr.rel (!%p19_p5) target bundleno = 4 (0x4), region = 111 }
 0x2c7   :  { %780 = vsyncpa [#allocation5], 1 }
 0x2c8   :  { %782 = vsyncpa [#allocation5 + $0x1], 1 }

</bundles_post_ra>
